<compile_context>
chip_gen: v6e
topology: v6e:2x2x1
jax: 0.10.0
libtpu: 0.0.40
codegen_flags: <defaults>
</compile_context>

<pallas_src>
import math

import jax
import jax.numpy as jnp
import numpy as np
from jax.experimental import pallas as pl
from jax.experimental.pallas import tpu as pltpu


def make_dct_matrix(L):
    """Orthonormal DCT-II matrix, W[n, k] = z_k * cos(k * (n + 0.5) * pi / L)."""
    n = (np.arange(L) + 0.5) * np.pi / L           # [L]
    k = np.arange(L)                               # [L]
    W = np.cos(np.outer(n, k))                     # [L, L]
    z = np.full((L,), np.sqrt(2.0 / L))
    z[0] = np.sqrt(1.0 / L)
    return (W * z[None, :]).astype(np.float32)


def _round_up(x, m):
    return ((x + m - 1) // m) * m


def _sublane(dtype):
    """Minimum sublane multiple for a dtype: 8 (f32) / 16 (bf16) / 32 (8-bit)."""
    return {4: 8, 2: 16, 1: 32}.get(jnp.dtype(dtype).itemsize, 8)


def _chip_config():
    """Returns (vmem_budget_bytes, is_v5e) for the local TPU, with fallbacks."""
    vmem = None
    try:
        vmem = int(pltpu.get_tpu_info().vmem_capacity_bytes)
    except Exception:
        pass
    kind = ""
    try:
        kind = jax.devices()[0].device_kind.lower()
    except Exception:
        pass
    if vmem is None:
        vmem = (64 << 20) if "v7" in kind else (128 << 20)
    is_v5e = ("v5 lite" in kind) or ("v5e" in kind) or ("v5lite" in kind)
    # Stay well below physical VMEM: ~48 MiB on v7x (64 MiB per TC),
    # ~96 MiB on v5e/v6e (128 MiB).
    budget = (48 << 20) if vmem <= (64 << 20) else (96 << 20)
    return budget, is_v5e


def _pack_factor(L, max_packed):
    """Smallest k such that k*L is a multiple of 128 (lane-dense), capped."""
    if L % 128 == 0:
        return 1
    k = 128 // math.gcd(L, 128)
    if k * L > max_packed:
        # TODO(synk): L with k*L in (512, 1024] (e.g. 40, 56, 80, 88) fall back
        # to masked vst.msk stores; v6e/v7x could pack further (or zero-pad the
        # weight's output columns to 128) once the f32 MXU roofline is checked.
        return 1
    return k


def build_idct_params(dct_length, max_packed=None):
    """Precompute W.T, its lane-packed block-diagonal form, and the pack factor."""
    W = make_dct_matrix(dct_length)                        # [L, L]
    WT = np.ascontiguousarray(W.T.astype(np.float32))      # self.W buffer
    if max_packed is None:
        # On v5e, a packed f32 width >= 384 exceeds the f32 MXU rate needed to
        # stay HBM-bound, so only pack when the packed width is exactly 128.
        _, is_v5e = _chip_config()
        max_packed = 128 if is_v5e else 512
    k = _pack_factor(dct_length, max_packed)
    # [y_0 | ... | y_{k-1}] @ kron(I_k, W.T) = [y_0 @ W.T | ... | y_{k-1} @ W.T]
    WT_packed = np.kron(np.eye(k, dtype=np.float32), WT)   # [k*L, k*L]
    return jnp.asarray(WT), jnp.asarray(WT_packed), k


def _idct_kernel(y_ref, wt_ref, x_ref):
    # y_ref : (tm, Lp) tile of (packed) input rows
    # wt_ref: (Lp, Lp) (block-diagonal) W.T -- same block every grid step
    # x_ref : (tm, Lp) lane-dense output tile
    x_ref[...] = jnp.dot(
        y_ref[...], wt_ref[...], preferred_element_type=jnp.float32
    ).astype(x_ref.dtype)


def _idct_packed_call(yp, WT_packed, *, tile_m):
    rows, Lp = yp.shape
    itemsize = jnp.dtype(yp.dtype).itemsize
    sub = _sublane(yp.dtype)
    vmem_budget, _ = _chip_config()

    # Per grid step: double-buffered input + output tiles, single-buffered W.T.
    wt_bytes = Lp * Lp * jnp.dtype(WT_packed.dtype).itemsize
    headroom = 2 << 20
    per_row = 4 * Lp * itemsize
    avail = max(vmem_budget - wt_bytes - headroom, per_row * sub)
    tm_cap = max(sub, (avail // per_row) // sub * sub)
    # TODO(synk): unpacked L >= ~3072 in f32 needs a K-split reduction grid
    # (the weight alone would overflow v7x's 64 MiB VMEM).

    # Balanced grid: pick the step count first, then split rows evenly so the
    # last block is not a tiny remainder (megacore shards grid steps, not rows).
    n_steps = pl.cdiv(rows, min(tile_m, tm_cap))
    if rows * Lp * itemsize >= (512 << 10):
        n_steps = max(n_steps, 2)
        n_steps += n_steps % 2          # even split across v7x's two TCs
    tm = min(max(_round_up(pl.cdiv(rows, n_steps), sub), sub), tm_cap)
    grid = (pl.cdiv(rows, tm),)         # ragged last block handled by Pallas

    vmem_limit = int(
        min(vmem_budget, max(tm * per_row + wt_bytes + headroom, 16 << 20))
    )

    cost = pl.CostEstimate(
        flops=2 * rows * Lp * Lp,
        transcendentals=0,
        bytes_accessed=2 * rows * Lp * itemsize + wt_bytes,
    )

    return pl.pallas_call(
        _idct_kernel,
        out_shape=jax.ShapeDtypeStruct((rows, Lp), yp.dtype),
        grid_spec=pltpu.PrefetchScalarGridSpec(
            num_scalar_prefetch=0,
            grid=grid,
            in_specs=[
                pl.BlockSpec((tm, Lp), lambda i: (i, 0)),       # packed row tile
                # Grid-invariant weight block: a single VMEM buffer suffices.
                pl.BlockSpec((Lp, Lp), lambda i: (0, 0),
                             pipeline_mode=pl.Buffered(1)),
            ],
            out_specs=pl.BlockSpec((tm, Lp), lambda i: (i, 0)),
        ),
        compiler_params=pltpu.CompilerParams(
            dimension_semantics=("parallel",),
            vmem_limit_bytes=vmem_limit,
        ),
        cost_estimate=cost,
    )(yp, WT_packed)


def _idct_tail_call(y_tail, WT):
    # <= pack-1 leftover rows: block dims equal the full array dims, so the
    # (8, 128) divisibility constraint does not apply and no padding is needed.
    rem, L = y_tail.shape
    return pl.pallas_call(
        _idct_kernel,
        out_shape=jax.ShapeDtypeStruct((rem, L), y_tail.dtype),
        grid_spec=pltpu.PrefetchScalarGridSpec(
            num_scalar_prefetch=0,
            grid=(1,),
            in_specs=[
                pl.BlockSpec((rem, L), lambda i: (0, 0)),
                pl.BlockSpec((L, L), lambda i: (0, 0)),
            ],
            out_specs=pl.BlockSpec((rem, L), lambda i: (0, 0)),
        ),
    )(y_tail, WT)


def inverse_dct(y, WT, WT_packed, pack, *, tile_m=4096):
    """Apply inverse DCT along the last axis of y (== y @ W.T) via Pallas."""
    orig_shape = y.shape
    L = WT.shape[0]
    Lp = WT_packed.shape[0]
    assert orig_shape[-1] == L and Lp == pack * L

    M = int(np.prod(orig_shape[:-1])) if len(orig_shape) > 1 else 1
    y2 = y.reshape(M, L)

    M_main = (M // pack) * pack
    rem = M - M_main

    pieces = []
    if M_main:
        rows = M_main // pack
        # Lane-dense packed rows; this reshape is a pure bitcast when rem == 0.
        yp = (y2 if rem == 0 else y2[:M_main]).reshape(rows, Lp)
        x_main = _idct_packed_call(yp, WT_packed, tile_m=tile_m)
        pieces.append(x_main.reshape(M_main, L))
    if rem:
        # TODO(synk): when rem != 0 the final concatenate still costs one HBM
        # pass over the output; folding the tail into the packed kernel would
        # remove it at the cost of a messier index_map.
        pieces.append(_idct_tail_call(y2[M_main:], WT))

    x2 = pieces[0] if len(pieces) == 1 else jnp.concatenate(pieces, axis=0)
    return x2.reshape(orig_shape)


if __name__ == "__main__":
    dct_length = 16                      # L
    batch, channels, frames = 2, 4, 16   # leading dims (...)

    # Deterministic parameter setup (module __init__ equivalent).
    WT, WT_packed, pack = build_idct_params(dct_length)

    key = jax.random.PRNGKey(0)
    y = jax.random.normal(
        key, (batch, channels, frames, dct_length), dtype=jnp.float32
    )

    x = inverse_dct(y, WT, WT_packed, pack)
    x = jax.block_until_ready(x)

    # Sanity check against plain-JAX reference (y @ W.T).
    x_ref = jnp.matmul(y, WT)
    assert x.shape == y.shape
    np.testing.assert_allclose(np.asarray(x), np.asarray(x_ref), rtol=1e-5, atol=1e-5)

    print("KERNEL_OK")
</pallas_src>

<mosaic_0001>
module attributes {stable_mosaic.version = 11 : i64} {
  func.func @_idct_kernel(%arg0: i32, %arg1: memref<16x128xf32, #tpu.memory_space<vmem>>, %arg2: memref<128x128xf32, #tpu.memory_space<vmem>>, %arg3: memref<16x128xf32, #tpu.memory_space<vmem>>) attributes {dimension_semantics = [#tpu.dimension_semantics<parallel>], iteration_bounds = array<i64: 1>, scalar_prefetch = 0 : i64, scratch_operands = 0 : i64, tpu.core_type = #tpu.core_type<tc>, window_params = [{transform_indices = @transform_0, window_bounds = array<i64: 16, 128>}, {pipeline_mode = #tpu.pipeline_mode<synchronous>, transform_indices = @transform_1, window_bounds = array<i64: 128, 128>}, {transform_indices = @transform_2, window_bounds = array<i64: 16, 128>}]} {
    %c0 = arith.constant 0 : index
    %c0_0 = arith.constant 0 : index
    %0 = vector.load %arg1[%c0, %c0_0] : memref<16x128xf32, #tpu.memory_space<vmem>>, vector<16x128xf32>
    %c0_1 = arith.constant 0 : index
    %c0_2 = arith.constant 0 : index
    %1 = vector.load %arg2[%c0_1, %c0_2] : memref<128x128xf32, #tpu.memory_space<vmem>>, vector<128x128xf32>
    %cst = arith.constant dense<0.000000e+00> : vector<16x128xf32>
    %2 = tpu.matmul %0, %1, %cst {dimension_numbers = #tpu.dot_dimension_numbers<[1], [0], [0], [1], [0, 0, 1, 1], [], []>} : vector<16x128xf32>, vector<128x128xf32>, vector<16x128xf32> -> vector<16x128xf32>
    %c0_3 = arith.constant 0 : index
    %c0_4 = arith.constant 0 : index
    %3 = vector.load %arg3[%c0_3, %c0_4] : memref<16x128xf32, #tpu.memory_space<vmem>>, vector<16x128xf32>
    tpu.vector_store %arg3[%c0_3, %c0_4], %2 {strides = array<i32>} : memref<16x128xf32, #tpu.memory_space<vmem>>, vector<16x128xf32>,
    return
  }
  func.func @transform_0(%arg0: i32) -> (i32, i32) {
    %c0_i32 = arith.constant 0 : i32
    %c0_i32_0 = arith.constant 0 : i32
    return %arg0, %c0_i32 : i32, i32
  }
  func.func @transform_1(%arg0: i32) -> (i32, i32) {
    %c0_i32 = arith.constant 0 : i32
    %c0_i32_0 = arith.constant 0 : i32
    %c0_i32_1 = arith.constant 0 : i32
    return %c0_i32, %c0_i32_0 : i32, i32
  }
  func.func @transform_2(%arg0: i32) -> (i32, i32) {
    %c0_i32 = arith.constant 0 : i32
    %c0_i32_0 = arith.constant 0 : i32
    return %arg0, %c0_i32 : i32, i32
  }
}

</mosaic_0001>

<bundles_post_ra>
// kernel: tpu_custom_call.1
= control target key start
LH: loop header
LB: loop body
LE: loop exit
PB: predicated region body
PF: predicated region fallthrough
CT: control target
= control target key end

     0   :  { %7 = vsyncpa [#allocation3], 0  ;;  %s315_s0 = inlined_call_operand.hbm [shape: f32[16,128], index: 0, kind: input, shape index: {}]   ;;  %s316_s1 = inlined_call_operand.hbm [shape: f32[128,128], index: 1, kind: input, shape index: {}]   ;;  %s317_s2 = inlined_call_operand.hbm [shape: f32[16,128], index: 2, kind: output, shape index: {}]  }
   0x1   :  { %8 = vsyncpa [#allocation6], 0 }
   0x2   :  { %9 = vsyncpa [#allocation4], 0  ;;  %s277_s9 = smov [#allocation2]  }
   0x3   :  { %s15_s10 = sshll.u32 %s277_s9, 4  ;;  %s16_s10 = int_to_ptr.vmem [resolvable:$true] %s15_s10 }
   0x4   :  { %s219_s11 = scalar_lea.vmem %s16_s10, 256  ;;  %p224_p1 = scmp.lt.s32.totalorder %s16_s10, %s16_s10 }
   0x5   :  { %p220_p0 = scmp.ne.s32.totalorder %s16_s10, %s219_s11  ;;  %p225_p2 = scmp.lt.s32.totalorder %s219_s11, %s219_s11 }
   0x7   :  { %p226_p3 = por %p225_p2, %p224_p1 }
   0x9   :  { %p227_p4 = pnand %p226_p3, %p220_p0 }
   0xb   :  { %230 = shalt.err (!%p227_p4)
}
   0xc   :  { %s278_s12 = smov 128   ;;  %s279_s13 = smov 8  }
   0xd   :  { %21 = dma.hbm_to_vmem [thread:$0]  %s315_s0, 256, %s16_s10, [#allocation3], %s278_s12, %s278_s12, %s279_s13  }
   0xe   :  { %s280_s16 = smov [#allocation5]  }
   0xf   :  { %s27_s17 = sshll.u32 %s280_s16, 4  ;;  %s28_s17 = int_to_ptr.vmem [resolvable:$true] %s27_s17 }
  0x10   :  { %s239_s18 = scalar_lea.vmem %s28_s17, 2048  ;;  %p244_p6 = scmp.lt.s32.totalorder %s28_s17, %s28_s17 }
  0x11   :  { %p240_p5 = scmp.ne.s32.totalorder %s28_s17, %s239_s18  ;;  %p245_p7 = scmp.lt.s32.totalorder %s239_s18, %s239_s18 }
  0x13   :  { %p246_p8 = por %p245_p7, %p244_p6 }
  0x15   :  { %p247_p9 = pnand %p246_p8, %p240_p5 }
  0x17   :  { %250 = shalt.err (!%p247_p9)
}
  0x18   :  { %33 = dma.hbm_to_vmem [thread:$0]  %s316_s1, 2048, %s28_s17, [#allocation6], %s278_s12, %s278_s12, %s279_s13  }
  0x19   :  { %271 = dma.done.wait [#allocation3], 256  }
  0x1a   :  { %272 = vsyncadd [#allocation3], 4294967040 }
  0x1b   :  { %273 = dma.done.wait [#allocation6], 2048  }
  0x1c   :  { %274 = vsyncadd [#allocation6], 4294965248  ;;  %v57_v0 = vld [vmem:[#allocation5 + $0x78] sm:$0xff]  ;;  %v56_v1 = vld [vmem:[#allocation5 + $0x70] sm:$0xff]  ;;  %s281_s0 = smov [#allocation7]  }
  0x1d   :  { %171 = vmatprep.subr.mxu0 %v57_v0  ;;  %v55_v2 = vld [vmem:[#allocation5 + $0x68] sm:$0xff]  ;;  %v54_v3 = vld [vmem:[#allocation5 + $0x60] sm:$0xff]  ;;  %v40_v4 = vld [vmem:[#allocation2] sm:$0xff]  ;;  %s140_s1 = sshll.u32 %s281_s0, 4  ;;  %s141_s1 = int_to_ptr.vmem [resolvable:$true] %s140_s1 }
  0x1e   :  { %172 = vmatpush3.msra.mxu0 %v57_v0  ;;  %v53_v5 = vld [vmem:[#allocation5 + $0x58] sm:$0xff]  ;;  %203 = vmatprep.mubr.f32.mxu0 %v40_v4  ;;  %v52_v6 = vld [vmem:[#allocation5 + $0x50] sm:$0xff]  ;;  %v51_v7 = vld [vmem:[#allocation5 + $0x48] sm:$0xff]  ;;  %s251_s21 = scalar_lea.vmem %s141_s1, 256  ;;  %p256_p11 = scmp.lt.s32.totalorder %s141_s1, %s141_s1 }
  0x1f   :  { %173 = vmatprep.subr.mxu0 %v56_v1  ;;  %v50_v8 = vld [vmem:[#allocation5 + $0x40] sm:$0xff]  ;;  %v49_v9 = vld [vmem:[#allocation5 + $0x38] sm:$0xff]  ;;  %v48_v10 = vld [vmem:[#allocation5 + $0x30] sm:$0xff]  ;;  %p252_p10 = scmp.ne.s32.totalorder %s141_s1, %s251_s21  ;;  %p257_p12 = scmp.lt.s32.totalorder %s251_s21, %s251_s21 }
  0x20   :  { %174 = vmatpush3.msra.mxu0 %v56_v1  ;;  %v47_v11 = vld [vmem:[#allocation5 + $0x28] sm:$0xff]  ;;  %v46_v12 = vld [vmem:[#allocation5 + $0x20] sm:$0xff]  ;;  %v45_v13 = vld [vmem:[#allocation5 + $0x18] sm:$0xff] }
  0x21   :  { %175 = vmatprep.subr.mxu0 %v55_v2  ;;  %v44_v14 = vld [vmem:[#allocation5 + $0x10] sm:$0xff]  ;;  %v43_v15 = vld [vmem:[#allocation5 + $0x8] sm:$0xff]  ;;  %v42_v16 = vld [vmem:[#allocation5] sm:$0xff]  ;;  %p258_p13 = por %p257_p12, %p256_p11 }
  0x22   :  { %176 = vmatpush3.msra.mxu0 %v55_v2  ;;  %v41_v17 = vld [vmem:[#allocation2 + $0x8] sm:$0xff] }
  0x23   :  { %177 = vmatprep.subr.mxu0 %v54_v3  ;;  %p259_p0 = pnand %p258_p13, %p252_p10 }
  0x24   :  { %178 = vmatpush3.msra.mxu0 %v54_v3 }
  0x25   :  { %179 = vmatprep.subr.mxu0 %v53_v5 }
  0x26   :  { %180 = vmatpush3.msra.mxu0 %v53_v5 }
  0x27   :  { %181 = vmatprep.subr.mxu0 %v52_v6 }
  0x28   :  { %182 = vmatpush3.msra.mxu0 %v52_v6 }
  0x29   :  { %183 = vmatprep.subr.mxu0 %v51_v7 }
  0x2a   :  { %184 = vmatpush3.msra.mxu0 %v51_v7 }
  0x2b   :  { %185 = vmatprep.subr.mxu0 %v50_v8 }
  0x2c   :  { %186 = vmatpush3.msra.mxu0 %v50_v8 }
  0x2d   :  { %187 = vmatprep.subr.mxu0 %v49_v9 }
  0x2e   :  { %188 = vmatpush3.msra.mxu0 %v49_v9 }
  0x2f   :  { %189 = vmatprep.subr.mxu0 %v48_v10 }
  0x30   :  { %190 = vmatpush3.msra.mxu0 %v48_v10 }
  0x31   :  { %191 = vmatprep.subr.mxu0 %v47_v11 }
  0x32   :  { %192 = vmatpush3.msra.mxu0 %v47_v11 }
  0x33   :  { %193 = vmatprep.subr.mxu0 %v46_v12 }
  0x34   :  { %194 = vmatpush3.msra.mxu0 %v46_v12 }
  0x35   :  { %195 = vmatprep.subr.mxu0 %v45_v13 }
  0x36   :  { %196 = vmatpush3.msra.mxu0 %v45_v13 }
  0x37   :  { %197 = vmatprep.subr.mxu0 %v44_v14 }
  0x38   :  { %198 = vmatpush3.msra.mxu0 %v44_v14 }
  0x39   :  { %199 = vmatprep.subr.mxu0 %v43_v15 }
  0x3a   :  { %200 = vmatpush3.msra.mxu0 %v43_v15 }
  0x3b   :  { %201 = vmatprep.subr.mxu0 %v42_v16 }
  0x3c   :  { %202 = vmatpush3.msra.mxu0 %v42_v16 }
  0x3d   :  { %204 = vmatmul.mubr.f32.vlgmr.msra.gmra.mxu0 %v41_v17 }
  0xfd   :  { %v205_v18 = vpop.f32.mrf.mxu0 }
  0xfe   :  { %134 = vst [vmem:[#allocation7 + $0x8] sm:$0xff] %v205_v18 }
  0xff   :  { %v124_v19 = vpop.f32.mrf.mxu0 }
 0x100   :  { %133 = vst [vmem:[#allocation7] sm:$0xff] %v124_v19 }
 0x101   :  { %262 = shalt.err (!%p259_p0)
}
 0x102   :  { %146 = dma.vmem_to_hbm [thread:$0]  %s141_s1, 256, %s317_s2, [#allocation4], %s278_s12, %s278_s12, %s279_s13  }
 0x103   :  { %275 = dma.done.wait [#allocation4], 256  }
 0x104   :  { %276 = vsyncadd [#allocation4], 4294967040 }
 0x105   :  { %150 = vsyncpa [#allocation3], 1 }
 0x106   :  { %151 = vsyncpa [#allocation6], 1 }
 0x107   :  { %152 = vsyncpa [#allocation4], 1 }

</bundles_post_ra>
